<compile_context>
chip_gen: v6e
topology: v6e:2x2x1
jax: 0.10.0
libtpu: 0.0.40
codegen_flags: <defaults>
</compile_context>

<pallas_src>
import functools

import jax
import jax.numpy as jnp
from jax.experimental import pallas as pl
from jax.experimental.pallas import tpu as pltpu


def _round_up(x: int, m: int) -> int:
    return ((x + m - 1) // m) * m


# ----------------------------------------------------------------------------
# Fully fused kernel: K encoders -> softmax attention fusion -> bottleneck
# -> decoder, all on one (C, tile_pix) pixel tile resident in VMEM.
# ----------------------------------------------------------------------------
def _fused_forward_kernel(*refs, K):
    img_refs = refs[:K]                                   # each (C_in, tp)
    (enc_w_ref, enc_b_ref, attn_a_ref, bott_w_ref, bott_b_ref,
     dec_w_ref, dec_b_ref, fused_ref, dec_ref) = refs[K:]

    enc_w = enc_w_ref[...]                                # (C_feat, C_in)
    enc_b = enc_b_ref[...]                                # (C_feat, 1)
    attn_a = attn_a_ref[...]                              # (C_feat, 1)

    # --- K encoders + attention logits -------------------------------------
    feats = []
    logits = []
    for k in range(K):
        x = img_refs[k][...].astype(jnp.float32)          # (C_in, tp)
        f = jnp.dot(enc_w, x, preferred_element_type=jnp.float32) + enc_b
        f = jnp.maximum(f, 0.0)                           # (C_feat, tp)
        feats.append(f)
        # VPU multiply + sublane reduce (XLU) -> (1, tp)
        logits.append(jnp.sum(attn_a * f, axis=0, keepdims=True))

    # --- stable softmax over the K views (K is small; fully unrolled) ------
    m = logits[0]
    for k in range(1, K):
        m = jnp.maximum(m, logits[k])
    exps = [jnp.exp(l - m) for l in logits]
    denom = exps[0]
    for k in range(1, K):
        denom = denom + exps[k]
    inv = pl.reciprocal(denom, approx=True)               # EUP slot, ~free

    fused = (exps[0] * inv) * feats[0]
    for k in range(1, K):
        fused = fused + (exps[k] * inv) * feats[k]        # (C_feat, tp)
    fused_ref[...] = fused.astype(fused_ref.dtype)

    # --- bottleneck (1x1 conv + ReLU) + decoder (1x1 conv) ------------------
    bott = jnp.dot(bott_w_ref[...], fused,
                   preferred_element_type=jnp.float32) + bott_b_ref[...]
    bott = jnp.maximum(bott, 0.0)                         # (C_bott, tp)
    dec = jnp.dot(dec_w_ref[...], bott,
                  preferred_element_type=jnp.float32) + dec_b_ref[...]
    dec_ref[...] = dec.astype(dec_ref.dtype)              # (C_out, tp)


# ----------------------------------------------------------------------------
# Forward wrapper (NCHW at the boundary; (C, pixels) tiles inside the kernel)
# ----------------------------------------------------------------------------
def rd4ad_fusion_forward(images, params, *, max_tp=2048, act_dtype=jnp.float32):
    """images: list of K arrays, each (B, C_in, H, W) float32 (NCHW).
    Returns (inputs, outputs) like the PyTorch module:
      inputs : fused features (B, C_feat, H, W)
      outputs: decoder output (B, C_out, H, W)
    """
    K = len(images)
    B, C_in, H, W = images[0].shape
    HW = H * W
    C_feat = params["enc_w"].shape[0]
    C_bott = params["bott_w"].shape[0]
    C_out = params["dec_w"].shape[0]

    # Pixel tile: lane-dense (multiple of 128), large to amortize grid-step
    # overhead, padded tail handled with zeros (sliced off afterwards).
    tp = min(max_tp, _round_up(HW, 128))
    HW_pad = _round_up(HW, tp)

    imgs = [img.reshape(B, C_in, HW) for img in images]   # free view, no transpose
    if HW_pad != HW:
        pad = HW_pad - HW
        imgs = [jnp.pad(x, ((0, 0), (0, 0), (0, pad))) for x in imgs]

    enc_b = params["enc_b"].reshape(C_feat, 1)
    attn_a = params["attn_a"].reshape(C_feat, 1)
    bott_b = params["bott_b"].reshape(C_bott, 1)
    dec_b = params["dec_b"].reshape(C_out, 1)

    grid = (B, HW_pad // tp)

    img_spec = pl.BlockSpec((None, C_in, tp), lambda b, p: (b, 0, p))
    in_specs = (
        [img_spec] * K
        + [
            pl.BlockSpec((C_feat, C_in), lambda b, p: (0, 0)),   # enc_w
            pl.BlockSpec((C_feat, 1), lambda b, p: (0, 0)),      # enc_b
            pl.BlockSpec((C_feat, 1), lambda b, p: (0, 0)),      # attn_a
            pl.BlockSpec((C_bott, C_feat), lambda b, p: (0, 0)), # bott_w
            pl.BlockSpec((C_bott, 1), lambda b, p: (0, 0)),      # bott_b
            pl.BlockSpec((C_out, C_bott), lambda b, p: (0, 0)),  # dec_w
            pl.BlockSpec((C_out, 1), lambda b, p: (0, 0)),       # dec_b
        ]
    )
    out_specs = [
        pl.BlockSpec((None, C_feat, tp), lambda b, p: (b, 0, p)),
        pl.BlockSpec((None, C_out, tp), lambda b, p: (b, 0, p)),
    ]
    out_shape = (
        jax.ShapeDtypeStruct((B, C_feat, HW_pad), act_dtype),
        jax.ShapeDtypeStruct((B, C_out, HW_pad), act_dtype),
    )

    kernel = functools.partial(_fused_forward_kernel, K=K)
    fused_flat, dec_flat = pl.pallas_call(
        kernel,
        out_shape=out_shape,
        grid_spec=pltpu.PrefetchScalarGridSpec(
            num_scalar_prefetch=0,
            grid=grid,
            in_specs=in_specs,
            out_specs=out_specs,
        ),
        compiler_params=pltpu.CompilerParams(
            dimension_semantics=("parallel", "parallel")),
        # TODO(synk): on v7x, pipeline_mode=pl.Buffered(3) on the image specs
        # can hide DMA issue latency; left at the default depth here.
    )(*imgs, params["enc_w"], enc_b, attn_a,
      params["bott_w"], bott_b, params["dec_w"], dec_b)

    inputs = fused_flat[:, :, :HW].reshape(B, C_feat, H, W)
    outputs = dec_flat[:, :, :HW].reshape(B, C_out, H, W)
    return inputs, outputs


def init_params(key, C_in, C_feat, C_bott, C_out):
    ks = jax.random.split(key, 7)
    s = 0.1
    return {
        "enc_w":  s * jax.random.normal(ks[0], (C_feat, C_in), jnp.float32),
        "enc_b":  s * jax.random.normal(ks[1], (C_feat,), jnp.float32),
        "attn_a": s * jax.random.normal(ks[2], (C_feat,), jnp.float32),
        "bott_w": s * jax.random.normal(ks[3], (C_bott, C_feat), jnp.float32),
        "bott_b": s * jax.random.normal(ks[4], (C_bott,), jnp.float32),
        "dec_w":  s * jax.random.normal(ks[5], (C_out, C_bott), jnp.float32),
        "dec_b":  s * jax.random.normal(ks[6], (C_out,), jnp.float32),
    }


def ref_forward(images, p):
    """Pure-JAX reference (same math, NCHW)."""
    def enc(x):
        f = jnp.einsum("dc,bchw->bdhw", p["enc_w"], x) \
            + p["enc_b"][None, :, None, None]
        return jnp.maximum(f, 0.0)
    feats = jnp.stack([enc(x) for x in images], 0)            # (K,B,Cf,H,W)
    logits = jnp.einsum("kbchw,c->kbhw", feats, p["attn_a"])
    wts = jax.nn.softmax(logits, axis=0)
    fused = jnp.einsum("kbhw,kbchw->bchw", wts, feats)
    bott = jnp.maximum(
        jnp.einsum("dc,bchw->bdhw", p["bott_w"], fused)
        + p["bott_b"][None, :, None, None], 0.0)
    dec = (jnp.einsum("dc,bchw->bdhw", p["dec_w"], bott)
           + p["dec_b"][None, :, None, None])
    return fused, dec


if __name__ == "__main__":
    # Small shapes consistent with the module's forward over a list of images.
    K = 3                                  # number of images / views fused
    B, C_in, H, W = 2, 4, 16, 16
    C_feat, C_bott, C_out = 32, 16, 4

    key = jax.random.PRNGKey(0)
    k_img, k_par = jax.random.split(key)
    img_keys = jax.random.split(k_img, K)
    images = [jax.random.normal(img_keys[i], (B, C_in, H, W), jnp.float32)
              for i in range(K)]
    params = init_params(k_par, C_in, C_feat, C_bott, C_out)

    inputs, outputs = rd4ad_fusion_forward(images, params)
    jax.block_until_ready(inputs)
    jax.block_until_ready(outputs)

    ref_in, ref_out = ref_forward(images, params)
    # Tolerance loosened slightly because the softmax denominator uses the
    # EUP approximate reciprocal (~2^-12 relative error).
    assert jnp.allclose(inputs, ref_in, atol=1e-3, rtol=1e-3), "fused mismatch"
    assert jnp.allclose(outputs, ref_out, atol=1e-3, rtol=1e-3), "decoder mismatch"

    print("KERNEL_OK")
</pallas_src>

<mosaic_0001>
module attributes {stable_mosaic.version = 11 : i64} {
  func.func @_fused_forward_kernel(%arg0: i32, %arg1: i32, %arg2: memref<1x4x256xf32, #tpu.memory_space<vmem>>, %arg3: memref<1x4x256xf32, #tpu.memory_space<vmem>>, %arg4: memref<1x4x256xf32, #tpu.memory_space<vmem>>, %arg5: memref<32x4xf32, #tpu.memory_space<vmem>>, %arg6: memref<32x1xf32, #tpu.memory_space<vmem>>, %arg7: memref<32x1xf32, #tpu.memory_space<vmem>>, %arg8: memref<16x32xf32, #tpu.memory_space<vmem>>, %arg9: memref<16x1xf32, #tpu.memory_space<vmem>>, %arg10: memref<4x16xf32, #tpu.memory_space<vmem>>, %arg11: memref<4x1xf32, #tpu.memory_space<vmem>>, %arg12: memref<1x32x256xf32, #tpu.memory_space<vmem>>, %arg13: memref<1x4x256xf32, #tpu.memory_space<vmem>>) attributes {dimension_semantics = [#tpu.dimension_semantics<parallel>, #tpu.dimension_semantics<parallel>], iteration_bounds = array<i64: 2, 1>, scalar_prefetch = 0 : i64, scratch_operands = 0 : i64, tpu.core_type = #tpu.core_type<tc>, window_params = [{transform_indices = @transform_0, window_bounds = array<i64: 1, 4, 256>}, {transform_indices = @transform_1, window_bounds = array<i64: 1, 4, 256>}, {transform_indices = @transform_2, window_bounds = array<i64: 1, 4, 256>}, {pipeline_mode = #tpu.pipeline_mode<synchronous>, transform_indices = @transform_3, window_bounds = array<i64: 32, 4>}, {pipeline_mode = #tpu.pipeline_mode<synchronous>, transform_indices = @transform_4, window_bounds = array<i64: 32, 1>}, {pipeline_mode = #tpu.pipeline_mode<synchronous>, transform_indices = @transform_5, window_bounds = array<i64: 32, 1>}, {pipeline_mode = #tpu.pipeline_mode<synchronous>, transform_indices = @transform_6, window_bounds = array<i64: 16, 32>}, {pipeline_mode = #tpu.pipeline_mode<synchronous>, transform_indices = @transform_7, window_bounds = array<i64: 16, 1>}, {pipeline_mode = #tpu.pipeline_mode<synchronous>, transform_indices = @transform_8, window_bounds = array<i64: 4, 16>}, {pipeline_mode = #tpu.pipeline_mode<synchronous>, transform_indices = @transform_9, window_bounds = array<i64: 4, 1>}, {transform_indices = @transform_10, window_bounds = array<i64: 1, 32, 256>}, {transform_indices = @transform_11, window_bounds = array<i64: 1, 4, 256>}]} {
    %c0 = arith.constant 0 : index
    %c0_0 = arith.constant 0 : index
    %0 = vector.load %arg5[%c0, %c0_0] : memref<32x4xf32, #tpu.memory_space<vmem>>, vector<32x4xf32>
    %c0_1 = arith.constant 0 : index
    %c0_2 = arith.constant 0 : index
    %1 = vector.load %arg6[%c0_1, %c0_2] : memref<32x1xf32, #tpu.memory_space<vmem>>, vector<32x1xf32>
    %c0_3 = arith.constant 0 : index
    %c0_4 = arith.constant 0 : index
    %2 = vector.load %arg7[%c0_3, %c0_4] : memref<32x1xf32, #tpu.memory_space<vmem>>, vector<32x1xf32>
    %c0_5 = arith.constant 0 : index
    %c0_6 = arith.constant 0 : index
    %c0_7 = arith.constant 0 : index
    %3 = vector.load %arg2[%c0_5, %c0_6, %c0_7] : memref<1x4x256xf32, #tpu.memory_space<vmem>>, vector<1x4x256xf32>
    %4 = vector.shape_cast %3 : vector<1x4x256xf32> to vector<4x256xf32>
    %cst = arith.constant dense<0.000000e+00> : vector<32x256xf32>
    %5 = tpu.matmul %0, %4, %cst {dimension_numbers = #tpu.dot_dimension_numbers<[1], [0], [0], [1], [0, 0, 1, 1], [], []>} : vector<32x4xf32>, vector<4x256xf32>, vector<32x256xf32> -> vector<32x256xf32>
    %6 = vector.broadcast %1 : vector<32x1xf32> to vector<32x256xf32>
    %7 = arith.addf %5, %6 : vector<32x256xf32>
    %cst_8 = arith.constant 0.000000e+00 : f32
    %8 = vector.broadcast %cst_8 : f32 to vector<32x256xf32>
    %9 = arith.maximumf %7, %8 : vector<32x256xf32>
    %10 = vector.broadcast %2 : vector<32x1xf32> to vector<32x256xf32>
    %11 = arith.mulf %10, %9 : vector<32x256xf32>
    %cst_9 = arith.constant dense<0.000000e+00> : vector<256xf32>
    %12 = vector.multi_reduction <add>, %11, %cst_9 [0] : vector<32x256xf32> to vector<256xf32>
    %13 = vector.shape_cast %12 : vector<256xf32> to vector<1x256xf32>
    %c0_10 = arith.constant 0 : index
    %c0_11 = arith.constant 0 : index
    %c0_12 = arith.constant 0 : index
    %14 = vector.load %arg3[%c0_10, %c0_11, %c0_12] : memref<1x4x256xf32, #tpu.memory_space<vmem>>, vector<1x4x256xf32>
    %15 = vector.shape_cast %14 : vector<1x4x256xf32> to vector<4x256xf32>
    %cst_13 = arith.constant dense<0.000000e+00> : vector<32x256xf32>
    %16 = tpu.matmul %0, %15, %cst_13 {dimension_numbers = #tpu.dot_dimension_numbers<[1], [0], [0], [1], [0, 0, 1, 1], [], []>} : vector<32x4xf32>, vector<4x256xf32>, vector<32x256xf32> -> vector<32x256xf32>
    %17 = vector.broadcast %1 : vector<32x1xf32> to vector<32x256xf32>
    %18 = arith.addf %16, %17 : vector<32x256xf32>
    %cst_14 = arith.constant 0.000000e+00 : f32
    %19 = vector.broadcast %cst_14 : f32 to vector<32x256xf32>
    %20 = arith.maximumf %18, %19 : vector<32x256xf32>
    %21 = vector.broadcast %2 : vector<32x1xf32> to vector<32x256xf32>
    %22 = arith.mulf %21, %20 : vector<32x256xf32>
    %cst_15 = arith.constant dense<0.000000e+00> : vector<256xf32>
    %23 = vector.multi_reduction <add>, %22, %cst_15 [0] : vector<32x256xf32> to vector<256xf32>
    %24 = vector.shape_cast %23 : vector<256xf32> to vector<1x256xf32>
    %c0_16 = arith.constant 0 : index
    %c0_17 = arith.constant 0 : index
    %c0_18 = arith.constant 0 : index
    %25 = vector.load %arg4[%c0_16, %c0_17, %c0_18] : memref<1x4x256xf32, #tpu.memory_space<vmem>>, vector<1x4x256xf32>
    %26 = vector.shape_cast %25 : vector<1x4x256xf32> to vector<4x256xf32>
    %cst_19 = arith.constant dense<0.000000e+00> : vector<32x256xf32>
    %27 = tpu.matmul %0, %26, %cst_19 {dimension_numbers = #tpu.dot_dimension_numbers<[1], [0], [0], [1], [0, 0, 1, 1], [], []>} : vector<32x4xf32>, vector<4x256xf32>, vector<32x256xf32> -> vector<32x256xf32>
    %28 = vector.broadcast %1 : vector<32x1xf32> to vector<32x256xf32>
    %29 = arith.addf %27, %28 : vector<32x256xf32>
    %cst_20 = arith.constant 0.000000e+00 : f32
    %30 = vector.broadcast %cst_20 : f32 to vector<32x256xf32>
    %31 = arith.maximumf %29, %30 : vector<32x256xf32>
    %32 = vector.broadcast %2 : vector<32x1xf32> to vector<32x256xf32>
    %33 = arith.mulf %32, %31 : vector<32x256xf32>
    %cst_21 = arith.constant dense<0.000000e+00> : vector<256xf32>
    %34 = vector.multi_reduction <add>, %33, %cst_21 [0] : vector<32x256xf32> to vector<256xf32>
    %35 = vector.shape_cast %34 : vector<256xf32> to vector<1x256xf32>
    %36 = arith.maximumf %13, %24 : vector<1x256xf32>
    %37 = arith.maximumf %36, %35 : vector<1x256xf32>
    %38 = arith.subf %13, %37 : vector<1x256xf32>
    %39 = math.exp %38 : vector<1x256xf32>
    %40 = arith.subf %24, %37 : vector<1x256xf32>
    %41 = math.exp %40 : vector<1x256xf32>
    %42 = arith.subf %35, %37 : vector<1x256xf32>
    %43 = math.exp %42 : vector<1x256xf32>
    %44 = arith.addf %39, %41 : vector<1x256xf32>
    %45 = arith.addf %44, %43 : vector<1x256xf32>
    %46 = tpu.reciprocal %45 {approx = true} : vector<1x256xf32> -> vector<1x256xf32>
    %47 = arith.mulf %39, %46 : vector<1x256xf32>
    %48 = vector.broadcast %47 : vector<1x256xf32> to vector<32x256xf32>
    %49 = arith.mulf %48, %9 : vector<32x256xf32>
    %50 = arith.mulf %41, %46 : vector<1x256xf32>
    %51 = vector.broadcast %50 : vector<1x256xf32> to vector<32x256xf32>
    %52 = arith.mulf %51, %20 : vector<32x256xf32>
    %53 = arith.addf %49, %52 : vector<32x256xf32>
    %54 = arith.mulf %43, %46 : vector<1x256xf32>
    %55 = vector.broadcast %54 : vector<1x256xf32> to vector<32x256xf32>
    %56 = arith.mulf %55, %31 : vector<32x256xf32>
    %57 = arith.addf %53, %56 : vector<32x256xf32>
    %c0_22 = arith.constant 0 : index
    %c0_23 = arith.constant 0 : index
    %c0_24 = arith.constant 0 : index
    %58 = vector.load %arg12[%c0_22, %c0_23, %c0_24] : memref<1x32x256xf32, #tpu.memory_space<vmem>>, vector<1x32x256xf32>
    %59 = vector.shape_cast %58 : vector<1x32x256xf32> to vector<32x256xf32>
    %60 = vector.shape_cast %57 : vector<32x256xf32> to vector<1x32x256xf32>
    tpu.vector_store %arg12[%c0_22, %c0_23, %c0_24], %60 {strides = array<i32>} : memref<1x32x256xf32, #tpu.memory_space<vmem>>, vector<1x32x256xf32>,
    %c0_25 = arith.constant 0 : index
    %c0_26 = arith.constant 0 : index
    %61 = vector.load %arg8[%c0_25, %c0_26] : memref<16x32xf32, #tpu.memory_space<vmem>>, vector<16x32xf32>
    %cst_27 = arith.constant dense<0.000000e+00> : vector<16x256xf32>
    %62 = tpu.matmul %61, %57, %cst_27 {dimension_numbers = #tpu.dot_dimension_numbers<[1], [0], [0], [1], [0, 0, 1, 1], [], []>} : vector<16x32xf32>, vector<32x256xf32>, vector<16x256xf32> -> vector<16x256xf32>
    %c0_28 = arith.constant 0 : index
    %c0_29 = arith.constant 0 : index
    %63 = vector.load %arg9[%c0_28, %c0_29] : memref<16x1xf32, #tpu.memory_space<vmem>>, vector<16x1xf32>
    %64 = vector.broadcast %63 : vector<16x1xf32> to vector<16x256xf32>
    %65 = arith.addf %62, %64 : vector<16x256xf32>
    %cst_30 = arith.constant 0.000000e+00 : f32
    %66 = vector.broadcast %cst_30 : f32 to vector<16x256xf32>
    %67 = arith.maximumf %65, %66 : vector<16x256xf32>
    %c0_31 = arith.constant 0 : index
    %c0_32 = arith.constant 0 : index
    %68 = vector.load %arg10[%c0_31, %c0_32] : memref<4x16xf32, #tpu.memory_space<vmem>>, vector<4x16xf32>
    %cst_33 = arith.constant dense<0.000000e+00> : vector<4x256xf32>
    %69 = tpu.matmul %68, %67, %cst_33 {dimension_numbers = #tpu.dot_dimension_numbers<[1], [0], [0], [1], [0, 0, 1, 1], [], []>} : vector<4x16xf32>, vector<16x256xf32>, vector<4x256xf32> -> vector<4x256xf32>
    %c0_34 = arith.constant 0 : index
    %c0_35 = arith.constant 0 : index
    %70 = vector.load %arg11[%c0_34, %c0_35] : memref<4x1xf32, #tpu.memory_space<vmem>>, vector<4x1xf32>
    %71 = vector.broadcast %70 : vector<4x1xf32> to vector<4x256xf32>
    %72 = arith.addf %69, %71 : vector<4x256xf32>
    %c0_36 = arith.constant 0 : index
    %c0_37 = arith.constant 0 : index
    %c0_38 = arith.constant 0 : index
    %73 = vector.load %arg13[%c0_36, %c0_37, %c0_38] : memref<1x4x256xf32, #tpu.memory_space<vmem>>, vector<1x4x256xf32>
    %74 = vector.shape_cast %73 : vector<1x4x256xf32> to vector<4x256xf32>
    %75 = vector.shape_cast %72 : vector<4x256xf32> to vector<1x4x256xf32>
    tpu.vector_store %arg13[%c0_36, %c0_37, %c0_38], %75 {strides = array<i32>} : memref<1x4x256xf32, #tpu.memory_space<vmem>>, vector<1x4x256xf32>,
    return
  }
  func.func @transform_0(%arg0: i32, %arg1: i32) -> (i32, i32, i32) {
    %c0_i32 = arith.constant 0 : i32
    %c0_i32_0 = arith.constant 0 : i32
    return %arg0, %c0_i32, %arg1 : i32, i32, i32
  }
  func.func @transform_1(%arg0: i32, %arg1: i32) -> (i32, i32, i32) {
    %c0_i32 = arith.constant 0 : i32
    %c0_i32_0 = arith.constant 0 : i32
    return %arg0, %c0_i32, %arg1 : i32, i32, i32
  }
  func.func @transform_2(%arg0: i32, %arg1: i32) -> (i32, i32, i32) {
    %c0_i32 = arith.constant 0 : i32
    %c0_i32_0 = arith.constant 0 : i32
    return %arg0, %c0_i32, %arg1 : i32, i32, i32
  }
  func.func @transform_3(%arg0: i32, %arg1: i32) -> (i32, i32) {
    %c0_i32 = arith.constant 0 : i32
    %c0_i32_0 = arith.constant 0 : i32
    %c0_i32_1 = arith.constant 0 : i32
    return %c0_i32, %c0_i32_0 : i32, i32
  }
  func.func @transform_4(%arg0: i32, %arg1: i32) -> (i32, i32) {
    %c0_i32 = arith.constant 0 : i32
    %c0_i32_0 = arith.constant 0 : i32
    %c0_i32_1 = arith.constant 0 : i32
    return %c0_i32, %c0_i32_0 : i32, i32
  }
  func.func @transform_5(%arg0: i32, %arg1: i32) -> (i32, i32) {
    %c0_i32 = arith.constant 0 : i32
    %c0_i32_0 = arith.constant 0 : i32
    %c0_i32_1 = arith.constant 0 : i32
    return %c0_i32, %c0_i32_0 : i32, i32
  }
  func.func @transform_6(%arg0: i32, %arg1: i32) -> (i32, i32) {
    %c0_i32 = arith.constant 0 : i32
    %c0_i32_0 = arith.constant 0 : i32
    %c0_i32_1 = arith.constant 0 : i32
    return %c0_i32, %c0_i32_0 : i32, i32
  }
  func.func @transform_7(%arg0: i32, %arg1: i32) -> (i32, i32) {
    %c0_i32 = arith.constant 0 : i32
    %c0_i32_0 = arith.constant 0 : i32
    %c0_i32_1 = arith.constant 0 : i32
    return %c0_i32, %c0_i32_0 : i32, i32
  }
  func.func @transform_8(%arg0: i32, %arg1: i32) -> (i32, i32) {
    %c0_i32 = arith.constant 0 : i32
    %c0_i32_0 = arith.constant 0 : i32
    %c0_i32_1 = arith.constant 0 : i32
    return %c0_i32, %c0_i32_0 : i32, i32
  }
  func.func @transform_9(%arg0: i32, %arg1: i32) -> (i32, i32) {
    %c0_i32 = arith.constant 0 : i32
    %c0_i32_0 = arith.constant 0 : i32
    %c0_i32_1 = arith.constant 0 : i32
    return %c0_i32, %c0_i32_0 : i32, i32
  }
  func.func @transform_10(%arg0: i32, %arg1: i32) -> (i32, i32, i32) {
    %c0_i32 = arith.constant 0 : i32
    %c0_i32_0 = arith.constant 0 : i32
    return %arg0, %c0_i32, %arg1 : i32, i32, i32
  }
  func.func @transform_11(%arg0: i32, %arg1: i32) -> (i32, i32, i32) {
    %c0_i32 = arith.constant 0 : i32
    %c0_i32_0 = arith.constant 0 : i32
    return %arg0, %c0_i32, %arg1 : i32, i32, i32
  }
}

</mosaic_0001>

<bundles_post_ra>
// kernel: tpu_custom_call.1
= control target key start
LH: loop header
LB: loop body
LE: loop exit
PB: predicated region body
PF: predicated region fallthrough
CT: control target
= control target key end

     0   :  { %s2193_s0 = inlined_call_operand.vmem [shape: f32[2,4,256], index: 0, kind: input, shape index: {}]   ;;  %s2194_s1 = inlined_call_operand.vmem [shape: f32[2,4,256], index: 1, kind: input, shape index: {}]   ;;  %s2195_s2 = inlined_call_operand.vmem [shape: f32[2,4,256], index: 2, kind: input, shape index: {}]   ;;  %s2196_s3 = inlined_call_operand.vmem [shape: f32[32,4], index: 3, kind: input, shape index: {}]   ;;  %s2197_s4 = inlined_call_operand.vmem [shape: f32[32,1], index: 4, kind: input, shape index: {}]   ;;  %s2198_s5 = inlined_call_operand.vmem [shape: f32[32,1], index: 5, kind: input, shape index: {}]   ;;  %s2199_s6 = inlined_call_operand.vmem [shape: f32[16,32], index: 6, kind: input, shape index: {}]   ;;  %s2200_s7 = inlined_call_operand.vmem [shape: f32[16,1], index: 7, kind: input, shape index: {}]   ;;  %s2201_s8 = inlined_call_operand.vmem [shape: f32[4,16], index: 8, kind: input, shape index: {}]   ;;  %s2202_s9 = inlined_call_operand.vmem [shape: f32[4,1], index: 9, kind: input, shape index: {}]   ;;  %s2203_s10 = inlined_call_operand.hbm [shape: f32[2,32,256], index: 10, kind: output, shape index: {0}]   ;;  %s2204_s11 = inlined_call_operand.hbm [shape: f32[2,4,256], index: 11, kind: output, shape index: {1}]  }
   0x1   :  { %2226 = sst [smem:[#allocation12_spill]] %s2193_s0 }
   0x2   :  { %2227 = sst [smem:[#allocation13_spill]] %s2194_s1 }
   0x3   :  { %17 = vsyncpa [#allocation3], 0 }
   0x4   :  { %19 = vsyncpa [#allocation3 + $0x1], 0 }
   0x5   :  { %20 = vsyncpa [#allocation5], 0 }
   0x6   :  { %22 = vsyncpa [#allocation5 + $0x1], 0  ;;  %s1722_s17 = smov 0   ;;  %s1724_s18 = smov 0  }
   0x7   :  { %s1726_s19 = smov 0   ;;  %s1728_s20 = smov 0  }
   0x8   :  { %s1730_s21 = smov 0   ;;  %s1732_s22 = smov 0  }
   0x9 LB: > { %2228 = sst [smem:[#allocation8_spill]] %s1642_s19  ;;  %s1416_s23 = sadd.s32 4294967295, %s1654_s22   ;;  %s1654_s22 = sphi %s1732_s22, %s28_s22   ;;  %s1650_s21 = sphi %s1730_s21, %s2256_s21   ;;  %s1646_s20 = sphi %s1728_s20, %s2255_s20   ;;  %s1642_s19 = sphi %s1726_s19, %s2254_s19   ;;  %s1638_s18 = sphi %s1724_s18, %s2258_s18   ;;  %s1634_s17 = sphi %s1722_s17, %s2257_s17  }
   0xa   : > { %2229 = sst [smem:[#allocation9_spill]] %s1650_s21  ;;  %s1417_s24 = sadd.s32 4294967294, %s1654_s22  }
   0xb   : > { %s40_s25 = sadd.s32 1, %s1650_s21  ;;  %s280_s26 = sadd.s32 1, %s1642_s19 }
   0xc   : > { %p42_p0 = scmp.ge.s32.totalorder %s40_s25, 2  ;;  %p290_p1 = scmp.ne.s32.totalorder %s1642_s19, %s1638_s18 }
   0xd   : > { %p291_p2 = scmp.eq.s32.totalorder %s1416_s23, 1  ;;  %p296_p3 = scmp.ne.s32.totalorder %s1638_s18, %s1634_s17 }
   0xe   : > { %s2260_s25 = smov (%p42_p0, %s40_s25), 0  ;;  %p297_p5 = scmp.eq.s32.totalorder %s1417_s24, 1 }
   0xf   : > { %2230 = sst [smem:[#allocation10_spill]] %s2260_s25  ;;  %p1762_p4 = por %p291_p2, %p290_p1 }
  0x10   : > { %s275_s28 = ssub.s32 %s1650_s21, %s2260_s25  ;;  %p1420_p6 = scmp.ge.s32.totalorder %s1654_s22, 1 }
  0x11   : > { %p278_p7 = scmp.eq.s32.totalorder %s275_s28, 0  ;;  %p1769_p8 = por %p297_p5, %p296_p3 }
  0x12   : > { %p403_p9 = scmp.lt.s32.totalorder %s1654_s22, 3 }
  0x13   : > { %s1775_s30 = scalar_select %p278_p7, %s1642_s19, %s280_s26  }
  0x14   : > { %p404_p10 = pnand %p1420_p6, %p403_p9 }
  0x15   : > { %2233 = sst [smem:[#allocation11_spill]] %s1775_s30  ;;  %p471_p11 = scmp.lt.s32.totalorder (!%p404_p10), %s1646_s20, 1 }
  0x16   : > { %407 = sbr.rel (%p404_p10) target bundleno = 757 (0x2f5), region = 60  ;;  %s2234_s0 = sld [smem:[#allocation12_spill]] (!%p404_p10) }
  0x17   : > { %s2235_s1 = sld [smem:[#allocation13_spill]] (!%p404_p10)  ;;  %s1658_s26 = smov (!%p404_p10), [#allocation2]  }
  0x18   : > { %s1552_s19 = sshll.u32 (!%p404_p10), %s1658_s26, 4  ;;  %s1553_s19 = int_to_ptr.vmem [resolvable:$false] %s1552_s19 }
  0x1b   : > { %v2208_v0 = vmov 0.0   ;;  %v506_v1 = vld [vmem:[%s2197_s4] sm:$0xff]  ;;  %s472_s14 = scalar_select %p471_p11, %s1646_s20, 1  ;;  %v1657_v2 = vmov 0   ;;  %v508_v3 = vld [vmem:[%s2197_s4 + $0x10] sm:$0xff]  ;;  %v507_v4 = vld [vmem:[%s2197_s4 + $0x8] sm:$0xff] }
  0x1c   : > { %619 = vmatprep.mubr.f32.mxu0 %v2208_v0  ;;  %769 = vmatprep.mubr.f32.mxu1 %v2208_v0  ;;  %v509_v5 = vld [vmem:[%s2197_s4 + $0x18] sm:$0xff]  ;;  %vm550_vm0 = vcmask 1043456   ;;  %v502_v11 = vld [vmem:[%s2196_s3] sm:$0xff]  ;;  %vm537_vm1 = vcmask 31744   ;;  %v503_v14 = vld [vmem:[%s2196_s3 + $0x8] sm:$0xff]  ;;  %vm1054_vm2 = vcmask 261120  }
  0x1d   : > { %1527 = vset.pattern.permute.xlu0 %v1657_v2  ;;  %1528 = vset.pattern.permute.xlu1 %v1657_v2  ;;  %s1458_s23 = sshll.u32 %s472_s14, 3  ;;  %v510_v13 = vld [vmem:[%s2198_s5] sm:$0xff]  ;;  %v511_v15 = vld [vmem:[%s2198_s5 + $0x8] sm:$0xff]  ;;  %v512_v16 = vld [vmem:[%s2198_s5 + $0x10] sm:$0xff]  ;;  %vm1149_vm3 = vcmask 130048  }
  0x1e   : > { %517 = vperm.xlu0 %1527, %v506_v1   ;;  %527 = vperm.xlu1 %1528, %v508_v3   ;;  %s478_s21 = scalar_lea.vmem %s2234_s0, %s1458_s23  ;;  %s498_s15 = scalar_lea.vmem %s2195_s2, %s1458_s23  ;;  %v504_v17 = vld [vmem:[%s2196_s3 + $0x10] sm:$0xff]  ;;  %v513_v18 = vld [vmem:[%s2198_s5 + $0x18] sm:$0xff]  ;;  %v1043_v19 = vld [vmem:[%s2200_s7 + $0x8] sm:$0xff] }
  0x1f   : > { %v514_v6 = vld [vmem:[%s478_s21] sm:$0xff]  ;;  %s488_s24 = scalar_lea.vmem %s2235_s1, %s1458_s23  ;;  %v505_v20 = vld [vmem:[%s2196_s3 + $0x18] sm:$0xff]  ;;  %s1461_s23 = sshll.u32 %s1646_s20, 10 }
  0x20   : > { %v828_v7 = vld [vmem:[%s498_s15] sm:$0xff]  ;;  %v536_v8 = vcombine.high %v514_v6, %v514_v6  ;;  %s2049_s15 = sand.u32 1, %s1638_s18  }
  0x21   : > { %v698_v9 = vld [vmem:[%s488_s24] sm:$0xff]  ;;  %v830_v12 = vcombine.high %v828_v7, %v828_v7  ;;  %s1421_s14 = sshll.u32 %s2049_s15, 6  ;;  %s1230_s24 = scalar_lea.sflag [#allocation3], %s2049_s15 }
  0x22   : > { %522 = vperm.xlu0 %1527, %v507_v4   ;;  %532 = vperm.xlu1 %1528, %v509_v5   ;;  %v700_v10 = vcombine.high %v698_v9, %v698_v9  ;;  %v1042_v21 = vld [vmem:[%s2200_s7] sm:$0xff]  ;;  %s2086_s16 = scalar_lea.vmem [#allocation2], %s1421_s14  ;;  %s2126_s14 = scalar_lea.hbm %s2203_s10, %s1461_s23 }
  0x23   : > { %1429 = vmatprep.subr.msk.mxu0 %vm550_vm0, %v536_v8  ;;  %v1143_v22 = vld [vmem:[%s2202_s9] sm:$0xf]  ;;  %s1250_s28 = sshll.u32 %s2086_s16, 4  ;;  %s2128_s28 = int_to_ptr.vmem [resolvable:$true] %s1250_s28 }
  0x24   : > { %1435 = vmatprep.subr.msk.mxu1 %vm550_vm0, %v700_v10  ;;  %1430 = vmatpush1.msk.msra.mxu0 %vm550_vm0, %v514_v6  ;;  %s1548_s25 = scalar_lea.vmem %s2128_s28, 1024  ;;  %p1555_p1 = scmp.lt.s32.totalorder %s2128_s28, %s1553_s19 }
  0x25   : > { %1436 = vmatpush1.msk.msra.mxu1 %vm550_vm0, %v698_v9  ;;  %1431 = vmatmul.mubr.msk.f32.vlgmr.msra.gmra.mxu0 %vm537_vm1, %v502_v11  ;;  %p1549_p12 = scmp.ne.s32.totalorder %s2128_s28, %s1548_s25 }
  0x26   : > { %1437 = vmatmul.mubr.msk.f32.vlgmr.msra.gmra.mxu1 %vm537_vm1, %v502_v11  ;;  %625 = vmatprep.mubr.f32.mxu0 %v2208_v0 }
  0x27   : > { %775 = vmatprep.mubr.f32.mxu1 %v2208_v0  ;;  %1441 = vmatprep.subr.msk.mxu0 %vm550_vm0, %v830_v12  ;;  %p1550_p13 = pnand %p1549_p12, %p1762_p4 }
  0x28   : > { %1442 = vmatpush1.msk.msra.mxu0 %vm550_vm0, %v828_v7  ;;  %654 = vperm.xlu0 %1527, %v510_v13  }
  0x29   : > { %1432 = vmatmul.mubr.msk.f32.gmra.mxu0 %vm537_vm1, %v503_v14  ;;  %659 = vperm.xlu1 %1528, %v511_v15   ;;  %p1551_p0 = pneg %p1550_p13 }
  0x2a   : > { %1438 = vmatmul.mubr.msk.f32.gmra.mxu1 %vm537_vm1, %v503_v14  ;;  %631 = vmatprep.mubr.f32.mxu0 %v2208_v0 }
  0x2b   : > { %781 = vmatprep.mubr.f32.mxu1 %v2208_v0 }
  0x2c   : > { %664 = vperm.xlu0 %1527, %v512_v16  }
  0x2d   : > { %1433 = vmatmul.mubr.msk.f32.gmra.mxu0 %vm537_vm1, %v504_v17  ;;  %669 = vperm.xlu1 %1528, %v513_v18  }
  0x2e   : > { %1439 = vmatmul.mubr.msk.f32.gmra.mxu1 %vm537_vm1, %v504_v17  ;;  %637 = vmatprep.mubr.f32.mxu0 %v2208_v0 }
  0x2f   : > { %787 = vmatprep.mubr.f32.mxu1 %v2208_v0 }
  0x30   : > { %1051 = vperm.xlu0 %1527, %v1043_v19  }
  0x31   : > { %1434 = vmatmul.mubr.msk.f32.gmra.mxu0 %vm537_vm1, %v505_v20  ;;  %1046 = vperm.xlu1 %1528, %v1042_v21  }
  0x32   : > { %1440 = vmatmul.mubr.msk.f32.gmra.mxu1 %vm537_vm1, %v505_v20  ;;  %899 = vmatprep.mubr.f32.mxu0 %v2208_v0 }
  0x33   : > { %1125 = vmatprep.mubr.f32.mxu1 %v2208_v0 }
  0x34   : > { %1146 = vperm.xlu0 %1527, %v1143_v22  }
  0x35   : > { %1443 = vmatmul.mubr.msk.f32.vlgmr.msra.gmra.mxu0 %vm537_vm1, %v502_v11 }
  0x36   : > { %905 = vmatprep.mubr.f32.mxu0 %v2208_v0 }
  0x39   : > { %1444 = vmatmul.mubr.msk.f32.gmra.mxu0 %vm537_vm1, %v503_v14 }
  0x3a   : > { %911 = vmatprep.mubr.f32.mxu0 %v2208_v0 }
  0x3d   : > { %1445 = vmatmul.mubr.msk.f32.gmra.mxu0 %vm537_vm1, %v504_v17 }
  0x3e   : > { %917 = vmatprep.mubr.f32.mxu0 %v2208_v0 }
  0x41   : > { %1446 = vmatmul.mubr.msk.f32.gmra.mxu0 %vm537_vm1, %v505_v20 }
  0x99   : > { %v1864_v23 = vpop.permute.xlu0 %517  ;;  %v1866_v24 = vpop.permute.xlu1 %527 }
  0x9d   : > { %v1868_v25 = vpop.permute.xlu0 %522  ;;  %v1876_v31 = vpop.permute.xlu1 %532 }
  0xa3   : > { %v1890_v41 = vpop.permute.xlu0 %654 }
  0xa4   : > { %v1907_v51 = vpop.permute.xlu1 %659 }
  0xa7   : > { %v1937_v6 = vpop.permute.xlu0 %664 }
  0xa8   : > { %v1962_v20 = vpop.permute.xlu1 %669 }
  0xe5   : > { %v621_v26 = vpop.f32.mrf.mxu0 }
  0xe6   : > { %v1871_v27 = vadd.f32 %v621_v26, %v1864_v23  ;;  %v771_v28 = vpop.f32.mrf.mxu1 }
  0xe7   : > { %v1874_v29 = vadd.f32 %v771_v28, %v1864_v23  ;;  %v623_v30 = vpop.f32.mrf.mxu0 }
  0xe8   : > { %v1879_v32 = vadd.f32 %v623_v30, %v1864_v23  ;;  %v773_v33 = vpop.f32.mrf.mxu1  ;;  %v2212_v37 = vmax.f32 %v1871_v27, 0.0 }
  0xe9   : > { %v2210_v34 = vmax.f32 %v1874_v29, 0.0  ;;  %v1883_v35 = vadd.f32 %v773_v33, %v1864_v23  ;;  %v627_v36 = vpop.f32.mrf.mxu0 }
  0xea   : > { %v1887_v38 = vadd.f32 %v627_v36, %v1868_v25  ;;  %v777_v39 = vpop.f32.mrf.mxu1  ;;  %v2214_v44 = vmax.f32 %v1879_v32, 0.0  ;;  %v672_v53 = vmul.f32 %v1890_v41, %v2212_v37 }
  0xeb   : > { %v2213_v40 = vmax.f32 %v1883_v35, 0.0  ;;  %v1893_v42 = vadd.f32 %v777_v39, %v1868_v25  ;;  %v629_v43 = vpop.f32.mrf.mxu0  ;;  %v802_v48 = vmul.f32 %v2210_v34, %v1890_v41 }
  0xec   : > { %v646_v45 = vmax.f32 %v1887_v38, 0.0  ;;  %v1898_v46 = vadd.f32 %v629_v43, %v1868_v25  ;;  %v779_v47 = vpop.f32.mrf.mxu1  ;;  %v673_v2 = vmul.f32 %v1890_v41, %v2214_v44 }
  0xed   : > { %v2225_v49 = vmax.f32 %v1893_v42, 0.0  ;;  %v1905_v50 = vadd.f32 %v779_v47, %v1868_v25  ;;  %v633_v52 = vpop.f32.mrf.mxu0  ;;  %v803_v61 = vmul.f32 %v2213_v40, %v1890_v41 }
  0xee   : > { %v2219_v54 = vmax.f32 %v1898_v46, 0.0  ;;  %v1914_v55 = vadd.f32 %v633_v52, %v1866_v24  ;;  %v783_v56 = vpop.f32.mrf.mxu1  ;;  %v674_v62 = vmul.f32 %v1907_v51, %v646_v45 }
  0xef   : > { %v2218_v57 = vmax.f32 %v1905_v50, 0.0  ;;  %v804_v58 = vmul.f32 %v2225_v49, %v1907_v51  ;;  %v1921_v59 = vadd.f32 %v783_v56, %v1866_v24  ;;  %v635_v60 = vpop.f32.mrf.mxu0 }
  0xf0   : > { %v648_v63 = vmax.f32 %v1914_v55, 0.0  ;;  %v1931_v1 = vadd.f32 %v635_v60, %v1866_v24  ;;  %v785_v3 = vpop.f32.mrf.mxu1  ;;  %v675_v12 = vmul.f32 %v1907_v51, %v2219_v54  ;;  %v680_v21 = vadd.f32 %v674_v62, %v672_v53 }
  0xf1   : > { %v810_v4 = vadd.f32 %v804_v58, %v802_v48  ;;  %v798_v5 = vmax.f32 %v1921_v59, 0.0  ;;  %v1940_v7 = vadd.f32 %v785_v3, %v1866_v24  ;;  %v805_v8 = vmul.f32 %v2218_v57, %v1907_v51  ;;  %v639_v9 = vpop.f32.mrf.mxu0 }
  0xf2   : > { %v676_v10 = vmul.f32 %v1937_v6, %v648_v63  ;;  %v2222_v11 = vmax.f32 %v1931_v1, 0.0  ;;  %v1953_v13 = vadd.f32 %v639_v9, %v1876_v31  ;;  %v789_v14 = vpop.f32.mrf.mxu1  ;;  %v689_v52 = vadd.f32 %v675_v12, %v673_v2 }
  0xf3   : > { %v806_v15 = vmul.f32 %v798_v5, %v1937_v6  ;;  %v2221_v16 = vmax.f32 %v1940_v7, 0.0  ;;  %v819_v17 = vadd.f32 %v805_v8, %v803_v61  ;;  %v1960_v18 = vadd.f32 %v789_v14, %v1876_v31  ;;  %v641_v19 = vpop.f32.mrf.mxu0 }
  0xf4   : > { %v677_v22 = vmul.f32 %v1937_v6, %v2222_v11  ;;  %v650_v26 = vmax.f32 %v1953_v13, 0.0  ;;  %v1969_v28 = vadd.f32 %v641_v19, %v1876_v31  ;;  %v791_v30 = vpop.f32.mrf.mxu1  ;;  %v681_v48 = vadd.f32 %v680_v21, %v676_v10 }
  0xf5   : > { %v811_v33 = vadd.f32 %v810_v4, %v806_v15  ;;  %v807_v36 = vmul.f32 %v2221_v16, %v1937_v6  ;;  %v800_v39 = vmax.f32 %v1960_v18, 0.0  ;;  %v1976_v43 = vadd.f32 %v791_v30, %v1876_v31  ;;  %v901_v47 = vpop.f32.mrf.mxu0 }
  0xf6   : > { %v2224_v53 = vmax.f32 %v1969_v28, 0.0  ;;  %v678_v56 = vmul.f32 %v1962_v20, %v650_v26  ;;  %v690_v3 = vadd.f32 %v689_v52, %v677_v22  ;;  %v1993_v15 = vadd.f32 %v901_v47, %v1864_v23 }
  0xf7   : > { %v820_v58 = vadd.f32 %v819_v17, %v807_v36  ;;  %v2223_v60 = vmax.f32 %v1976_v43, 0.0  ;;  %v808_v61 = vmul.f32 %v800_v39, %v1962_v20  ;;  %v903_v62 = vpop.f32.mrf.mxu0 }
  0xf8   : > { %v679_v4 = vmul.f32 %v1962_v20, %v2224_v53  ;;  %v682_v2 = vadd.f32 %v681_v48, %v678_v56  ;;  %v1999_v22 = vadd.f32 %v903_v62, %v1864_v23 }
  0xf9   : > { %v809_v8 = vmul.f32 %v2223_v60, %v1962_v20  ;;  %v812_v9 = vadd.f32 %v811_v33, %v808_v61  ;;  %v907_v10 = vpop.f32.mrf.mxu0  ;;  %v2211_v61 = vmax.f32 %v1993_v15, 0.0 }
  0xfa   : > { %v691_v12 = vadd.f32 %v690_v3, %v679_v4  ;;  %v1996_v17 = vadd.f32 %v907_v10, %v1868_v25  ;;  %v683_v21 = vrot.slane %v682_v2, 4  ;;  %v2216_v23 = vmax.f32 %v1999_v22, 0.0 }
  0xfb   : > { %v821_v14 = vadd.f32 %v820_v58, %v809_v8  ;;  %v909_v19 = vpop.f32.mrf.mxu0  ;;  %v813_v36 = vrot.slane %v812_v9, 4 }
  0xfc   : > { %v2002_v30 = vadd.f32 %v909_v19, %v1868_v25  ;;  %v2215_v33 = vmax.f32 %v1996_v17, 0.0  ;;  %v692_v52 = vrot.slane %v691_v12, 4  ;;  %v684_v4 = vadd.f32 %v683_v21, %v682_v2 }
  0xfd   : > { %v913_v48 = vpop.f32.mrf.mxu0  ;;  %v822_v56 = vrot.slane %v821_v14, 4  ;;  %v814_v62 = vadd.f32 %v813_v36, %v812_v9  ;;  %v932_v2 = vmul.f32 %v2211_v61, %v1890_v41 }
  0xfe   : > { %v2217_v47 = vmax.f32 %v2002_v30, 0.0  ;;  %v2007_v58 = vadd.f32 %v913_v48, %v1866_v24  ;;  %v934_v8 = vmul.f32 %v2215_v33, %v1907_v51  ;;  %v693_v0 = vadd.f32 %v692_v52, %v691_v12 }
  0xff   : > { %v915_v3 = vpop.f32.mrf.mxu0  ;;  %v823_v48 = vadd.f32 %v822_v56, %v821_v14  ;;  %v685_v12 = vrot.slane %v684_v4, 2  ;;  %v933_v14 = vmul.f32 %v2216_v23, %v1890_v41  ;;  %v815_v52 = vrot.slane %v814_v62, 2 }
 0x100   : > { %v928_v25 = vmax.f32 %v2007_v58, 0.0  ;;  %v2016_v10 = vadd.f32 %v915_v3, %v1866_v24  ;;  %v935_v34 = vmul.f32 %v2217_v47, %v1907_v51  ;;  %v940_v56 = vadd.f32 %v934_v8, %v932_v2 }
 0x101   : > { %v919_v19 = vpop.f32.mrf.mxu0  ;;  %v694_v37 = vrot.slane %v693_v0, 2  ;;  %v686_v2 = vadd.f32 %v685_v12, %v684_v4 }
 0x102   : > { %v936_v9 = vmul.f32 %v928_v25, %v1937_v6  ;;  %v2220_v21 = vmax.f32 %v2016_v10, 0.0  ;;  %v2029_v24 = vadd.f32 %v919_v19, %v1876_v31  ;;  %v824_v19 = vrot.slane %v823_v48, 2 }
 0x103   : > { %v921_v36 = vpop.f32.mrf.mxu0  ;;  %v949_v40 = vadd.f32 %v935_v34, %v933_v14  ;;  %v695_v23 = vadd.f32 %v694_v37, %v693_v0  ;;  %v687_v14 = vrot.slane %v686_v2, 1 }
 0x104   : > { %v2035_v51 = vadd.f32 %v921_v36, %v1876_v31  ;;  %v937_v3 = vmul.f32 %v2220_v21, %v1937_v6  ;;  %v930_v61 = vmax.f32 %v2029_v24, 0.0  ;;  %v941_v33 = vadd.f32 %v940_v56, %v936_v9 }
 0x105   : > { %v816_v36 = vadd.f32 %v815_v52, %v814_v62  ;;  %v825_v47 = vadd.f32 %v824_v19, %v823_v48  ;;  %v696_v56 = vrot.slane %v695_v23, 1  ;;  %v2238_v24 = vmax.f32 %v1976_v43, 0.0 }
 0x106   : > { %v931_v44 = vmax.f32 %v2035_v51, 0.0  ;;  %v938_v41 = vmul.f32 %v930_v61, %v1962_v20  ;;  %v950_v31 = vadd.f32 %v949_v40, %v937_v3  ;;  %v688_v3 = vadd.f32 %v687_v14, %v686_v2 }
 0x107   : > { %v817_v21 = vrot.slane %v816_v36, 1  ;;  %v826_v16 = vrot.slane %v825_v47, 1  ;;  %v2244_v43 = vmax.f32 %v2002_v30, 0.0 }
 0x108   : > { %v939_v8 = vmul.f32 %v931_v44, %v1962_v20  ;;  %v942_v6 = vadd.f32 %v941_v33, %v938_v41  ;;  %v697_v20 = vadd.f32 %v696_v56, %v695_v23 }
 0x109   : > { %v818_v53 = vadd.f32 %v817_v21, %v816_v36  ;;  %v827_v4 = vadd.f32 %v826_v16, %v825_v47 }
 0x10a   : > { %v951_v57 = vadd.f32 %v950_v31, %v939_v8  ;;  %v943_v54 = vrot.slane %v942_v6, 4 }
 0x10b   : > { %v958_v48 = vmax.f32 %v688_v3, %v818_v53  ;;  %v959_v52 = vmax.f32 %v697_v20, %v827_v4 }
 0x10c   : > { %v952_v34 = vrot.slane %v951_v57, 4  ;;  %v944_v9 = vadd.f32 %v943_v54, %v942_v6 }
 0x10e   : > { %v953_v11 = vadd.f32 %v952_v34, %v951_v57  ;;  %v945_v60 = vrot.slane %v944_v9, 2 }
 0x110   : > { %v954_v40 = vrot.slane %v953_v11, 2  ;;  %v946_v49 = vadd.f32 %v945_v60, %v944_v9 }
 0x112   : > { %v955_v62 = vadd.f32 %v954_v40, %v953_v11  ;;  %v947_v33 = vrot.slane %v946_v49, 1 }
 0x114   : > { %v956_v0 = vrot.slane %v955_v62, 1  ;;  %v948_v37 = vadd.f32 %v947_v33, %v946_v49 }
 0x116   : > { %v957_v12 = vadd.f32 %v956_v0, %v955_v62  ;;  %v960_v19 = vmax.f32 %v958_v48, %v948_v37 }
 0x118   : > { %v961_v41 = vmax.f32 %v959_v52, %v957_v12  ;;  %v962_v54 = vsub.f32 %v688_v3, %v960_v19  ;;  %v968_v31 = vsub.f32 %v818_v53, %v960_v19  ;;  %v974_v8 = vsub.f32 %v948_v37, %v960_v19 }
 0x11a   : > { %v963_v57 = vsub.f32 %v697_v20, %v961_v41  ;;  %v969_v6 = vsub.f32 %v827_v4, %v961_v41  ;;  %v964_v34 = vmul.f32 1.442695, %v962_v54  ;;  %v970_v2 = vmul.f32 1.442695, %v968_v31 }
 0x11b   : > { %v976_v21 = vmul.f32 1.442695, %v974_v8  ;;  %v975_v60 = vsub.f32 %v957_v12, %v961_v41 }
 0x11c   : > { %v966_v23 = vmul.f32 1.442695, %v963_v57  ;;  %1532 = vpow2.f32 %v964_v34  ;;  %v972_v11 = vmul.f32 1.442695, %v969_v6 }
 0x11d   : > { %1534 = vpow2.f32 %v970_v2  ;;  %v978_v49 = vmul.f32 1.442695, %v975_v60 }
 0x11e   : > { %1536 = vpow2.f32 %v976_v21 }
 0x11f   : > { %1538 = vpow2.f32 %v966_v23  ;;  %v2245_v23 = vmax.f32 %v1996_v17, 0.0 }
 0x120   : > { %1540 = vpow2.f32 %v972_v11 }
 0x121   : > { %1542 = vpow2.f32 %v978_v49  ;;  %v2246_v49 = vmax.f32 %v1879_v32, 0.0  ;;  %v2250_v32 = vmax.f32 %v1874_v29, 0.0  ;;  %v1040_v29 = vld [vmem:[%s2199_s6] sm:$0xff] }
 0x129   : > { %v1533_v16 = vpop.eup %1532 }
 0x12a   : > { %v1535_v47 = vpop.eup %1534 }
 0x12b   : > { %v1537_v53 = vpop.eup %1536  ;;  %v980_v36 = vadd.f32 %v1535_v47, %v1533_v16 }
 0x12c   : > { %v1539_v14 = vpop.eup %1538 }
 0x12d   : > { %v1541_v9 = vpop.eup %1540  ;;  %v982_v56 = vadd.f32 %v1537_v53, %v980_v36 }
 0x12e   : > { %v981_v40 = vadd.f32 %v1541_v9, %v1539_v14  ;;  %v1543_v3 = vpop.eup %1542 }
 0x12f   : > { %1544 = vrcp.f32 %v982_v56 }
 0x130   : > { %v983_v20 = vadd.f32 %v1543_v3, %v981_v40  ;;  %v2249_v40 = vmax.f32 %v1999_v22, 0.0  ;;  %v2252_v22 = vmov 0.0  }
 0x132   : > { %1546 = vrcp.f32 %v983_v20 }
 0x13c   : > { %v1545_v4 = vpop.eup %1544 }
 0x13d   : > { %v986_v62 = vmul.f32 %v1545_v4, %v1533_v16  ;;  %v996_v33 = vmul.f32 %v1545_v4, %v1535_v47  ;;  %v1014_v0 = vmul.f32 %v1545_v4, %v1537_v53  ;;  %v2247_v16 = vmax.f32 %v1883_v35, 0.0 }
 0x13e   : > { %v2251_v4 = vmax.f32 %v1993_v15, 0.0  ;;  %v1041_v15 = vld [vmem:[%s2199_s6 + $0x8] sm:$0xff] }
 0x13f   : > { %v1547_v37 = vpop.eup %1546  ;;  %v994_v48 = vmul.f32 %v986_v62, %v650_v26  ;;  %v1004_v12 = vmul.f32 %v996_v33, %v800_v39  ;;  %v1022_v52 = vmul.f32 %v1014_v0, %v930_v61  ;;  %v992_v19 = vmul.f32 %v986_v62, %v648_v63 }
 0x140   : > { %v1015_v41 = vmul.f32 %v1547_v37, %v1543_v3  ;;  %v987_v54 = vmul.f32 %v1547_v37, %v1539_v14  ;;  %v997_v31 = vmul.f32 %v1547_v37, %v1541_v9  ;;  %v1002_v8 = vmul.f32 %v996_v33, %v798_v5 }
 0x141   : > { %v1012_v57 = vadd.f32 %v1004_v12, %v994_v48  ;;  %v1020_v13 = vmul.f32 %v1014_v0, %v928_v25  ;;  %v990_v18 = vmul.f32 %v986_v62, %v646_v45  ;;  %v2236_v26 = vmax.f32 %v1893_v42, 0.0  ;;  %v1052_v12 = vpop.permute.xlu0 %1051 }
 0x142   : > { %v1023_v55 = vmul.f32 %v1015_v41, %v931_v44  ;;  %v2237_v63 = vmax.f32 %v1969_v28, 0.0  ;;  %v1005_v59 = vmul.f32 %v997_v31, %v2238_v24  ;;  %v2239_v5 = vmax.f32 %v1931_v1, 0.0 }
 0x143   : > { %v1000_v39 = vmul.f32 %v996_v33, %v2236_v26  ;;  %v1030_v58 = vadd.f32 %v1022_v52, %v1012_v57  ;;  %v2240_v25 = vmax.f32 %v1940_v7, 0.0  ;;  %v2241_v45 = vmax.f32 %v2016_v10, 0.0  ;;  %v1047_v52 = vpop.permute.xlu1 %1046 }
 0x144   : > { %v995_v61 = vmul.f32 %v987_v54, %v2237_v63  ;;  %v993_v6 = vmul.f32 %v987_v54, %v2239_v5  ;;  %v1010_v34 = vadd.f32 %v1002_v8, %v992_v19  ;;  %v2242_v44 = vmax.f32 %v1898_v46, 0.0 }
 0x145   : > { %v1003_v38 = vmul.f32 %v997_v31, %v2240_v25  ;;  %v1021_v42 = vmul.f32 %v1015_v41, %v2241_v45  ;;  %v2243_v28 = vmax.f32 %v1905_v50, 0.0  ;;  %v1019_v60 = vmul.f32 %v1015_v41, %v2244_v43  ;;  %1038 = vst [vmem:[%s2086_s16 + $0x30] sm:$0xff] %v1030_v58 }
 0x146   : > { %v1013_v2 = vadd.f32 %v1005_v59, %v995_v61  ;;  %v991_v51 = vmul.f32 %v987_v54, %v2242_v44  ;;  %v1028_v7 = vadd.f32 %v1020_v13, %v1010_v34  ;;  %v1008_v10 = vadd.f32 %v1000_v39, %v990_v18  ;;  %v1142_v39 = vld [vmem:[%s2201_s8] sm:$0xf] }
 0x147   : > { %v1001_v21 = vmul.f32 %v997_v31, %v2243_v28  ;;  %v1011_v1 = vadd.f32 %v1003_v38, %v993_v6  ;;  %v1018_v11 = vmul.f32 %v1014_v0, %v2245_v23  ;;  %v989_v30 = vmul.f32 %v987_v54, %v2246_v49 }
 0x148   : > { %v1031_v46 = vadd.f32 %v1023_v55, %v1013_v2  ;;  %v999_v47 = vmul.f32 %v997_v31, %v2247_v16  ;;  %1036 = vst [vmem:[%s2086_s16 + $0x20] sm:$0xff] %v1028_v7  ;;  %v2248_v14 = vmax.f32 %v1871_v27, 0.0  ;;  %v1017_v3 = vmul.f32 %v1015_v41, %v2249_v40 }
 0x149   : > { %v1009_v50 = vadd.f32 %v1001_v21, %v991_v51  ;;  %v1029_v53 = vadd.f32 %v1021_v42, %v1011_v1  ;;  %v1026_v36 = vadd.f32 %v1018_v11, %v1008_v10  ;;  %v998_v20 = vmul.f32 %v996_v33, %v2250_v32 }
 0x14a   : > { %v988_v9 = vmul.f32 %v986_v62, %v2248_v14  ;;  %1039 = vst [vmem:[%s2086_s16 + $0x38] sm:$0xff] %v1031_v46  ;;  %1085 = vmatprep.subr.mxu1 %v1031_v46  ;;  %v1007_v56 = vadd.f32 %v999_v47, %v989_v30  ;;  %v1016_v62 = vmul.f32 %v1014_v0, %v2251_v4 }
 0x14b   : > { %v1027_v17 = vadd.f32 %v1019_v60, %v1009_v50  ;;  %1086 = vmatpush1.msra.mxu1 %v1030_v58  ;;  %1037 = vst [vmem:[%s2086_s16 + $0x28] sm:$0xff] %v1029_v53  ;;  %1034 = vst [vmem:[%s2086_s16 + $0x10] sm:$0xff] %v1026_v36 }
 0x14c   : > { %1087 = vmatprep.subr.mxu1 %v1029_v53  ;;  %v1025_v35 = vadd.f32 %v1017_v3, %v1007_v56  ;;  %v1006_v27 = vadd.f32 %v998_v20, %v988_v9 }
 0x14d   : > { %1035 = vst [vmem:[%s2086_s16 + $0x18] sm:$0xff] %v1027_v17  ;;  %1088 = vmatpush1.msra.mxu1 %v1028_v7 }
 0x14e   : > { %1089 = vmatprep.subr.mxu1 %v1027_v17  ;;  %1033 = vst [vmem:[%s2086_s16 + $0x8] sm:$0xff] %v1025_v35  ;;  %v1024_v37 = vadd.f32 %v1016_v62, %v1006_v27 }
 0x14f   : > { %1090 = vmatpush1.msra.mxu1 %v1026_v36 }
 0x150   : > { %1091 = vmatprep.subr.mxu1 %v1025_v35  ;;  %1032 = vst [vmem:[%s2086_s16] sm:$0xff] %v1024_v37  ;;  %s1554_s16 = scalar_lea.vmem %s1553_s19, 2048 }
 0x151   : > { %1092 = vmatpush1.msra.mxu1 %v1024_v37  ;;  %p1556_p2 = scmp.lt.s32.totalorder %s1554_s16, %s1548_s25 }
 0x152   : > { %1447 = vmatmul.mubr.msk.f32.vlgmr.msra.gmra.mxu1 %vm1054_vm2, %v1040_v29 }
 0x153   : > { %1131 = vmatprep.mubr.f32.mxu1 %v2252_v22  ;;  %p1557_p3 = por %p1556_p2, %p1555_p1 }
 0x155   : > { %p1558_p5 = pnand %p1557_p3, %p1551_p0 }
 0x156   : > { %1448 = vmatmul.mubr.msk.f32.gmra.mxu1 %vm1054_vm2, %v1041_v15 }
 0x157   : > { %1217 = vmatprep.mubr.f32.mxu1 %v2252_v22 }
 0x212   : > { %v1127_v33 = vpop.f32.mrf.mxu1 }
 0x213   : > { %v1128_v8 = vadd.f32 %v1127_v33, %v1047_v52 }
 0x214   : > { %v1129_v0 = vpop.f32.mrf.mxu1 }
 0x215   : > { %v1130_v54 = vadd.f32 %v1129_v0, %v1047_v52  ;;  %v1138_v26 = vmax.f32 %v1128_v8, 0.0 }
 0x216   : > { %v1133_v48 = vpop.f32.mrf.mxu1 }
 0x217   : > { %v1134_v19 = vadd.f32 %v1133_v48, %v1052_v12  ;;  %v1139_v18 = vmax.f32 %v1130_v54, 0.0 }
 0x218   : > { %v1135_v41 = vpop.f32.mrf.mxu1 }
 0x219   : > { %v1136_v31 = vadd.f32 %v1135_v41, %v1052_v12  ;;  %v1140_v13 = vmax.f32 %v1134_v19, 0.0 }
 0x21b   : > { %v1141_v57 = vmax.f32 %v1136_v31, 0.0 }
 0x21d   : > { %1181 = vmatprep.subr.mxu1 %v1141_v57 }
 0x21e   : > { %1182 = vmatpush1.msra.mxu1 %v1140_v13 }
 0x21f   : > { %1183 = vmatprep.subr.mxu1 %v1139_v18 }
 0x220   : > { %1184 = vmatpush1.msra.mxu1 %v1138_v26 }
 0x221   : > { %1449 = vmatmul.mubr.msk.f32.vlgmr.msra.gmra.mxu1 %vm1149_vm3, %v1142_v39 }
 0x222   : > { %1561 = shalt.err (!%p1558_p5)
}
 0x223   : > { %s1562_s21 = scalar_lea.hbm %s2126_s14, 1024  ;;  %s1566_s12 = scalar_lea.hbm %s2203_s10, 2048 }
 0x224   : > { %p1563_p6 = scmp.ne.s32.totalorder %s2126_s14, %s1562_s21  ;;  %p1567_p10 = scmp.lt.s32.totalorder %s2126_s14, %s2203_s10 }
 0x225   : > { %p1568_p11 = scmp.lt.s32.totalorder %s1566_s12, %s1562_s21 }
 0x226   : > { %p1564_p7 = pnand %p1563_p6, %p1762_p4 }
 0x227   : > { %p1569_p12 = por %p1568_p11, %p1567_p10 }
 0x228   : > { %p1565_p9 = pneg %p1564_p7 }
 0x22a   : > { %p1570_p13 = pnand %p1569_p12, %p1565_p9 }
 0x22c   : > { %1573 = shalt.err (!%p1570_p13)
}
 0x22d   : > { %s1659_s25 = smov 256   ;;  %s1660_s19 = smov 16   ;;  %v1147_v63 = vpop.permute.xlu0 %1146 }
 0x22e   : > { %1463 = dma.vmem_to_hbm [thread:$0]  (%p1762_p4), %s2128_s28, 1024, %s2126_s14, %s1230_s24, %s1659_s25, %s1659_s25, %s1660_s19  }
 0x22f   : > { %s1422_s16 = sshll.u32 %s2049_s15, 3  ;;  %s1462_s21 = sshll.u32 %s1646_s20, 7 }
 0x230   : > { %s469_s30 = scalar_lea.vmem [#allocation4], %s1422_s16  ;;  %s1267_s26 = scalar_lea.hbm %s2204_s11, %s1462_s21 }
 0x231   : > { %s1269_s23 = sshll.u32 %s469_s30, 4  ;;  %s1235_s0 = scalar_lea.sflag [#allocation5], %s2049_s15  ;;  %s1270_s23 = int_to_ptr.vmem [resolvable:$true] %s1269_s23 }
 0x232   : > { %s1574_s1 = scalar_lea.vmem %s1270_s23, 128  ;;  %s1661_s28 = smov [#allocation4]  }
 0x233   : > { %p1575_p0 = scmp.ne.s32.totalorder %s1270_s23, %s1574_s1  ;;  %s1578_s14 = sshll.u32 %s1661_s28, 4  ;;  %s1579_s14 = int_to_ptr.vmem [resolvable:$false] %s1578_s14 }
 0x234   : > { %s1580_s20 = scalar_lea.vmem %s1579_s14, 256  ;;  %p1581_p3 = scmp.lt.s32.totalorder %s1270_s23, %s1579_s14 }
 0x235   : > { %p1576_p1 = pnand %p1575_p0, %p1762_p4  ;;  %p1582_p5 = scmp.lt.s32.totalorder %s1580_s20, %s1574_s1 }
 0x237   : > { %p1577_p2 = pneg %p1576_p1  ;;  %p1583_p6 = por %p1582_p5, %p1581_p3 }
 0x239   : > { %p1584_p7 = pnand %p1583_p6, %p1577_p2 }
 0x2e1   : > { %v1219_v55 = vpop.f32.mrf.mxu1 }
 0x2e2   : > { %v1220_v24 = vadd.f32 %v1219_v55, %v1147_v63 }
 0x2e3   : > { %v1221_v61 = vpop.f32.mrf.mxu1 }
 0x2e4   : > { %v1222_v59 = vadd.f32 %v1221_v61, %v1147_v63 }
 0x2e6   : > { %v1226_v5 = vcombine.low %v1220_v24, %v1222_v59 }
 0x2e8   : > { %1228 = vst [vmem:[%s469_s30] sm:$0xff] %v1226_v5 }
 0x2e9   : > { %1587 = shalt.err (!%p1584_p7)
}
 0x2ea   : > { %s1588_s24 = scalar_lea.hbm %s1267_s26, 128  ;;  %s1592_s19 = scalar_lea.hbm %s2204_s11, 256 }
 0x2eb   : > { %p1589_p9 = scmp.ne.s32.totalorder %s1267_s26, %s1588_s24  ;;  %p1593_p12 = scmp.lt.s32.totalorder %s1267_s26, %s2204_s11 }
 0x2ec   : > { %p1594_p13 = scmp.lt.s32.totalorder %s1592_s19, %s1588_s24 }
 0x2ed   : > { %p1590_p10 = pnand %p1589_p9, %p1762_p4 }
 0x2ee   : > { %p1595_p0 = por %p1594_p13, %p1593_p12 }
 0x2ef   : > { %p1591_p11 = pneg %p1590_p10 }
 0x2f1   : > { %p1596_p1 = pnand %p1595_p0, %p1591_p11 }
 0x2f3   : > { %1599 = shalt.err (!%p1596_p1)
}
 0x2f4   : > { %1464 = dma.vmem_to_hbm [thread:$0]  (%p1762_p4), %s1270_s23, 128, %s1267_s26, %s1235_s0  }
 0x2f5 PF: > { %p1474_p2 = scmp.ge.s32.totalorder %s1654_s22, 2  ;;  %s1281_s1 = sand.u32 1, %s1634_s17  }
 0x2f6   : > { %s1282_s30 = scalar_lea.sflag [#allocation3], %s1281_s1 }
 0x2f7   : > { %p1468_p3 = pnand %p1474_p2, %p1769_p8 }
 0x2f9   : > { %p1469_p5 = pneg %p1468_p3 }
 0x2fb   : > { %1625 = dma.done.wait (%p1469_p5), %s1282_s30, 1024  }
 0x2fc   : > { %1627 = vsyncadd (%p1469_p5), %s1282_s30, 4294966272  ;;  %s1291_s12 = scalar_lea.sflag [#allocation5], %s1281_s1 }
 0x2fd   : > { %1629 = dma.done.wait (%p1469_p5), %s1291_s12, 128  }
 0x2fe   : > { %1631 = vsyncadd (%p1469_p5), %s1291_s12, 4294967168  ;;  %s28_s22 = sadd.s32 1, %s1654_s22   ;;  %s2253_s0 = sld [smem:[#allocation8_spill]] }
 0x2ff   : > { %p25_p6 = scmp.ge.s32.totalorder %s28_s22, 4   ;;  %s2254_s19 = sld [smem:[#allocation11_spill]] }
 0x300   : > { %s2255_s20 = sld [smem:[#allocation9_spill]]  ;;  %s2257_s17 = smov %s1638_s18 }
 0x301   : > { %s2256_s21 = sld [smem:[#allocation10_spill]]  ;;  %27 = sbr.rel (!%p25_p6) target bundleno = 9 (0x9), region = 118 }
 0x304   : > { %s2258_s18 = smov %s2253_s0 }
 0x306   :  { %1296 = vsyncpa [#allocation3], 1 }
 0x307   :  { %1298 = vsyncpa [#allocation3 + $0x1], 1 }
 0x308   :  { %1299 = vsyncpa [#allocation5], 1 }
 0x309   :  { %1301 = vsyncpa [#allocation5 + $0x1], 1 }

</bundles_post_ra>
